<compile_context>
chip_gen: v5e
topology: v5e:2x2
jax: 0.10.0
libtpu: 0.0.40
codegen_flags: <defaults>
</compile_context>

<pallas_src>
import functools

import jax
import jax.numpy as jnp
from jax import lax
from jax.experimental import pallas as pl
from jax.experimental.pallas import tpu as pltpu


# ----------------------------------------------------------------------------
# Pallas kernel: one chunk of timesteps of a FUSED bidirectional LSTM layer.
#
# Refs (in):   gates_ref (Tc, Bp, 8H)  precomputed x@W_ih + b, gate-grouped,
#                                       bwd direction already time-reversed
#              whh_ref   (2H, 8H)      block-diagonal recurrent weights
# Refs (out):  out_ref   (Tc, Bp, 2H)  [h_fwd | h_bwd(reversed time)]
#              cN_ref    (Bp, 2H)      final cell state (written on last step)
# Scratch:     h_sc, c_sc (Bp, 2H)     recurrent state across grid steps
# ----------------------------------------------------------------------------
def _bilstm_chunk_kernel(gates_ref, whh_ref, out_ref, cN_ref, h_sc, c_sc,
                         *, hidden, chunk, total_t):
    c_idx = pl.program_id(0)

    @pl.when(c_idx == 0)
    def _():
        h_sc[...] = jnp.zeros_like(h_sc)
        c_sc[...] = jnp.zeros_like(c_sc)

    H2 = 2 * hidden  # fused fwd+bwd state width

    def step(t, carry):
        h, c = carry
        # recurrent projection only; input projection was hoisted to XLA
        g = gates_ref[t] + jnp.dot(h, whh_ref[...],
                                   preferred_element_type=jnp.float32)
        # full-tile activations selected by lane group (g-gate lanes -> tanh),
        # split only for the final c/h combine
        lane = lax.broadcasted_iota(jnp.int32, g.shape, 1)
        is_g_gate = (lane >= 2 * H2) & (lane < 3 * H2)
        act = jnp.where(is_g_gate, jnp.tanh(g), jax.nn.sigmoid(g))
        i_g = act[:, 0 * H2:1 * H2]
        f_g = act[:, 1 * H2:2 * H2]
        g_g = act[:, 2 * H2:3 * H2]
        o_g = act[:, 3 * H2:4 * H2]
        c_new = f_g * c + i_g * g_g
        h_new = o_g * jnp.tanh(c_new)
        # ragged last chunk: do not update state past the real sequence end
        valid = (c_idx * chunk + t) < total_t
        h_new = jnp.where(valid, h_new, h)
        c_new = jnp.where(valid, c_new, c)
        out_ref[t] = h_new.astype(out_ref.dtype)
        return (h_new, c_new)

    h, c = lax.fori_loop(0, chunk, step, (h_sc[...], c_sc[...]), unroll=True)
    h_sc[...] = h
    c_sc[...] = c

    @pl.when(c_idx == pl.num_programs(0) - 1)
    def _():
        cN_ref[...] = c


def _vmem_limit_bytes(chunk, bp, hidden):
    f32 = 4
    gates = 2 * chunk * bp * 8 * hidden * f32     # double-buffered input slab
    whh = 2 * 2 * hidden * 8 * hidden * f32       # weights (constant index)
    out = 2 * chunk * bp * 2 * hidden * f32
    cn = 2 * bp * 2 * hidden * f32
    scr = 2 * bp * 2 * hidden * f32
    need = gates + whh + out + cn + scr
    return int(min(120 * 1024 * 1024, max(4 * 1024 * 1024, 2 * need)))


def bilstm_layer(gates_in, whh_c, *, hidden, chunk):
    """Fused bidirectional LSTM recurrence over precomputed input gates.

    gates_in: (T, Bp, 8H) gate-grouped input projections (bwd time-reversed)
    whh_c:    (2H, 8H)    block-diagonal recurrent weights
    Returns out (T, Bp, 2H) with [:, :, :H] = fwd hidden (forward time) and
    [:, :, H:] = bwd hidden (reversed time), plus final cell state (Bp, 2H).
    """
    T, Bp, G = gates_in.shape
    H = hidden
    assert G == 8 * H
    chunk = max(1, min(chunk, T))
    n_chunks = pl.cdiv(T, chunk)

    flops = 2 * T * Bp * (2 * H) * (8 * H) + 12 * T * Bp * 2 * H
    transcendentals = T * Bp * (2 * 8 * H + 2 * H)
    bytes_accessed = 4 * (gates_in.size + whh_c.size
                          + T * Bp * 2 * H + Bp * 2 * H)

    out, cN = pl.pallas_call(
        functools.partial(_bilstm_chunk_kernel,
                          hidden=H, chunk=chunk, total_t=T),
        out_shape=(jax.ShapeDtypeStruct((T, Bp, 2 * H), jnp.float32),
                   jax.ShapeDtypeStruct((Bp, 2 * H), jnp.float32)),
        grid_spec=pltpu.PrefetchScalarGridSpec(
            num_scalar_prefetch=0,
            grid=(n_chunks,),
            in_specs=[
                pl.BlockSpec((chunk, Bp, 8 * H), lambda c: (c, 0, 0)),
                pl.BlockSpec((2 * H, 8 * H), lambda c: (0, 0)),
            ],
            out_specs=[
                pl.BlockSpec((chunk, Bp, 2 * H), lambda c: (c, 0, 0)),
                pl.BlockSpec((Bp, 2 * H), lambda c: (0, 0)),
            ],
            scratch_shapes=[
                pltpu.VMEM((Bp, 2 * H), jnp.float32),
                pltpu.VMEM((Bp, 2 * H), jnp.float32),
            ]),
        compiler_params=pltpu.CompilerParams(
            dimension_semantics=("arbitrary",),   # time carries state
            vmem_limit_bytes=_vmem_limit_bytes(chunk, Bp, H)),
        cost_estimate=pl.CostEstimate(flops=flops,
                                      transcendentals=transcendentals,
                                      bytes_accessed=bytes_accessed),
    )(gates_in, whh_c)
    return out, cN


# ----------------------------------------------------------------------------
# PyramidalRNN forward (LSTM, 2 layers, bidirectional, batch_first).
# params[layer][dir] = (w_ih (4H, Din), w_hh (4H, H), bias (4H,)) PyTorch layout
# ----------------------------------------------------------------------------
def pyramidal_rnn_forward(inputs, params, *, chunk=32):
    B, S, F = inputs.shape
    if S % 2:
        inputs = jnp.concatenate(
            [inputs, jnp.zeros((B, 1, F), inputs.dtype)], axis=1)
        S += 1
    T = S // 2
    # pyramid: halve time, double features; go time-major
    x = inputs.reshape(B, T, 2 * F)
    x = jnp.transpose(x, (1, 0, 2)).astype(jnp.float32)   # (T, B, 2F)

    # pad batch to a multiple of 8 sublanes (done once, sliced off at the end)
    Bp = ((B + 7) // 8) * 8
    if Bp != B:
        x = jnp.concatenate(
            [x, jnp.zeros((T, Bp - B, x.shape[-1]), x.dtype)], axis=1)

    layer_in = x
    h_list, c_list = [], []
    for layer_params in params:
        (w_ih_f, w_hh_f, b_f), (w_ih_b, w_hh_b, b_b) = layer_params
        H = w_hh_f.shape[1]

        # (1) hoisted input projection: one big GEMM per direction (XLA/MXU)
        gf = jnp.einsum('tbd,gd->tbg', layer_in, w_ih_f) + b_f          # fwd
        gb = jnp.einsum('tbd,gd->tbg', layer_in[::-1], w_ih_b) + b_b    # bwd, rev time

        # (2) gate-grouped fused layout [i_f,i_b,f_f,f_b,g_f,g_b,o_f,o_b]
        gates_in = jnp.stack(
            [gf.reshape(T, Bp, 4, H), gb.reshape(T, Bp, 4, H)],
            axis=3).reshape(T, Bp, 8 * H)

        # (3) block-diagonal recurrent weights (2H, 8H) in the grouped layout
        whh_c = jnp.zeros((2 * H, 4, 2, H), jnp.float32)
        whh_c = whh_c.at[:H, :, 0, :].set(w_hh_f.T.reshape(H, 4, H))
        whh_c = whh_c.at[H:, :, 1, :].set(w_hh_b.T.reshape(H, 4, H))
        whh_c = whh_c.reshape(2 * H, 8 * H)

        out, cN = bilstm_layer(gates_in, whh_c, hidden=H, chunk=chunk)

        h_fwd = out[:, :, :H]          # forward time order
        h_bwd = out[::-1, :, H:]       # stored in reversed time -> flip back
        layer_in = jnp.concatenate([h_fwd, h_bwd], axis=-1)  # (T, Bp, 2H)

        hN = out[T - 1]                # [h_fwd(T-1) | h_bwd final]  (Bp, 2H)
        h_list += [hN[:, :H], hN[:, H:]]
        c_list += [cN[:, :H], cN[:, H:]]
        # TODO(synk): inter-layer dropout skipped (dropout_p=0 / inference).

    output = jnp.transpose(layer_in, (1, 0, 2))[:B]        # (B, T, 2H)
    h_n = jnp.stack(h_list, axis=0)[:, :B]                 # (4, B, H)
    c_n = jnp.stack(c_list, axis=0)[:, :B]
    return output, (h_n, c_n)


# ----------------------------------------------------------------------------
# Pure-JAX reference (lax.scan) for correctness check.
# ----------------------------------------------------------------------------
def _lstm_ref_dir(x_tbd, w_ih, w_hh, b, reverse):
    T, B, D = x_tbd.shape
    H = w_hh.shape[1]
    xs = x_tbd[::-1] if reverse else x_tbd

    def step(carry, xt):
        h, c = carry
        g = xt @ w_ih.T + h @ w_hh.T + b
        i = jax.nn.sigmoid(g[:, 0 * H:1 * H])
        f = jax.nn.sigmoid(g[:, 1 * H:2 * H])
        gg = jnp.tanh(g[:, 2 * H:3 * H])
        o = jax.nn.sigmoid(g[:, 3 * H:4 * H])
        c = f * c + i * gg
        h = o * jnp.tanh(c)
        return (h, c), h

    (hN, cN), out = lax.scan(
        step,
        (jnp.zeros((B, H), jnp.float32), jnp.zeros((B, H), jnp.float32)), xs)
    if reverse:
        out = out[::-1]
    return out, hN, cN


def pyramidal_rnn_ref(inputs, params):
    B, S, F = inputs.shape
    if S % 2:
        inputs = jnp.concatenate(
            [inputs, jnp.zeros((B, 1, F), inputs.dtype)], axis=1)
        S += 1
    x = inputs.reshape(B, S // 2, 2 * F)
    layer_in = jnp.transpose(x, (1, 0, 2)).astype(jnp.float32)
    h_list, c_list = [], []
    for layer_params in params:
        dir_outs = []
        for d, (w_ih, w_hh, b) in enumerate(layer_params):
            out, hN, cN = _lstm_ref_dir(layer_in, w_ih, w_hh, b, d == 1)
            dir_outs.append(out)
            h_list.append(hN)
            c_list.append(cN)
        layer_in = jnp.concatenate(dir_outs, axis=-1)
    return (jnp.transpose(layer_in, (1, 0, 2)),
            (jnp.stack(h_list, 0), jnp.stack(c_list, 0)))


# ----------------------------------------------------------------------------
# Deterministic parameter init (matches PyTorch LSTM uniform(-1/sqrt(H), 1/sqrt(H)))
# ----------------------------------------------------------------------------
def init_params(key, input_size, hidden_size):
    k = 1.0 / jnp.sqrt(hidden_size)
    params = []
    for layer in range(2):
        din = 2 * input_size if layer == 0 else 2 * hidden_size
        dirs = []
        for d in range(2):
            key, k1, k2, k3, k4 = jax.random.split(key, 5)
            w_ih = jax.random.uniform(k1, (4 * hidden_size, din),
                                      jnp.float32, -k, k)
            w_hh = jax.random.uniform(k2, (4 * hidden_size, hidden_size),
                                      jnp.float32, -k, k)
            b_ih = jax.random.uniform(k3, (4 * hidden_size,), jnp.float32, -k, k)
            b_hh = jax.random.uniform(k4, (4 * hidden_size,), jnp.float32, -k, k)
            dirs.append((w_ih, w_hh, b_ih + b_hh))   # fused bias
        params.append(dirs)
    return params


if __name__ == "__main__":
    batch, seq_len, input_size, hidden_size = 2, 8, 16, 32

    key = jax.random.PRNGKey(0)
    key, xk = jax.random.split(key)
    inputs = jax.random.normal(xk, (batch, seq_len, input_size), jnp.float32)
    params = init_params(key, input_size, hidden_size)

    fwd = jax.jit(pyramidal_rnn_forward)
    output, (h_n, c_n) = fwd(inputs, params)
    jax.block_until_ready((output, h_n, c_n))

    # sanity check vs pure-JAX reference
    ref_out, (ref_h, ref_c) = pyramidal_rnn_ref(inputs, params)
    assert output.shape == (batch, seq_len // 2, 2 * hidden_size)
    assert h_n.shape == (4, batch, hidden_size)
    assert c_n.shape == (4, batch, hidden_size)
    assert jnp.allclose(output, ref_out, atol=1e-4), "output mismatch"
    assert jnp.allclose(h_n, ref_h, atol=1e-4), "h_n mismatch"
    assert jnp.allclose(c_n, ref_c, atol=1e-4), "c_n mismatch"

    print("KERNEL_OK")
</pallas_src>

<mosaic_0001>
module attributes {stable_mosaic.version = 11 : i64} {
  func.func @_bilstm_chunk_kernel(%arg0: i32, %arg1: memref<4x8x256xf32, #tpu.memory_space<vmem>>, %arg2: memref<64x256xf32, #tpu.memory_space<vmem>>, %arg3: memref<4x8x64xf32, #tpu.memory_space<vmem>>, %arg4: memref<8x64xf32, #tpu.memory_space<vmem>>, %arg5: memref<8x64xf32, #tpu.memory_space<vmem>>, %arg6: memref<8x64xf32, #tpu.memory_space<vmem>>) attributes {dimension_semantics = [#tpu.dimension_semantics<arbitrary>], iteration_bounds = array<i64: 1>, scalar_prefetch = 0 : i64, scratch_operands = 2 : i64, tpu.core_type = #tpu.core_type<tc>, window_params = [{transform_indices = @transform_0, window_bounds = array<i64: 4, 8, 256>}, {pipeline_mode = #tpu.pipeline_mode<synchronous>, transform_indices = @transform_1, window_bounds = array<i64: 64, 256>}, {transform_indices = @transform_2, window_bounds = array<i64: 4, 8, 64>}, {pipeline_mode = #tpu.pipeline_mode<synchronous>, transform_indices = @transform_3, window_bounds = array<i64: 8, 64>}]} {
    %c0_i32 = arith.constant 0 : i32
    %0 = arith.cmpi eq, %arg0, %c0_i32 : i32
    %1 = arith.extui %0 : i1 to i32
    %c0_i32_0 = arith.constant 0 : i32
    %2 = arith.cmpi ne, %1, %c0_i32_0 : i32
    scf.if %2 {
      %cst_56 = arith.constant 0.000000e+00 : f32
      %158 = vector.broadcast %cst_56 : f32 to vector<8x64xf32>
      %c0_57 = arith.constant 0 : index
      %c0_58 = arith.constant 0 : index
      %159 = vector.load %arg5[%c0_57, %c0_58] : memref<8x64xf32, #tpu.memory_space<vmem>>, vector<8x64xf32>
      tpu.vector_store %arg5[%c0_57, %c0_58], %158 {strides = array<i32>} : memref<8x64xf32, #tpu.memory_space<vmem>>, vector<8x64xf32>,
      %cst_59 = arith.constant 0.000000e+00 : f32
      %160 = vector.broadcast %cst_59 : f32 to vector<8x64xf32>
      %c0_60 = arith.constant 0 : index
      %c0_61 = arith.constant 0 : index
      %161 = vector.load %arg6[%c0_60, %c0_61] : memref<8x64xf32, #tpu.memory_space<vmem>>, vector<8x64xf32>
      tpu.vector_store %arg6[%c0_60, %c0_61], %160 {strides = array<i32>} : memref<8x64xf32, #tpu.memory_space<vmem>>, vector<8x64xf32>,
    } else {
    }
    %c0 = arith.constant 0 : index
    %c0_1 = arith.constant 0 : index
    %3 = vector.load %arg5[%c0, %c0_1] : memref<8x64xf32, #tpu.memory_space<vmem>>, vector<8x64xf32>
    %c0_2 = arith.constant 0 : index
    %c0_3 = arith.constant 0 : index
    %4 = vector.load %arg6[%c0_2, %c0_3] : memref<8x64xf32, #tpu.memory_space<vmem>>, vector<8x64xf32>
    %c0_i32_4 = arith.constant 0 : i32
    %5 = arith.index_cast %c0_i32_4 : i32 to index
    %c0_5 = arith.constant 0 : index
    %c0_6 = arith.constant 0 : index
    %6 = vector.load %arg1[%5, %c0_5, %c0_6] : memref<4x8x256xf32, #tpu.memory_space<vmem>>, vector<1x8x256xf32>
    %7 = vector.shape_cast %6 : vector<1x8x256xf32> to vector<8x256xf32>
    %c0_7 = arith.constant 0 : index
    %c0_8 = arith.constant 0 : index
    %8 = vector.load %arg2[%c0_7, %c0_8] : memref<64x256xf32, #tpu.memory_space<vmem>>, vector<64x256xf32>
    %cst = arith.constant dense<0.000000e+00> : vector<8x256xf32>
    %9 = tpu.matmul %3, %8, %cst {dimension_numbers = #tpu.dot_dimension_numbers<[1], [0], [0], [1], [0, 0, 1, 1], [], []>} : vector<8x64xf32>, vector<64x256xf32>, vector<8x256xf32> -> vector<8x256xf32>
    %10 = arith.addf %7, %9 : vector<8x256xf32>
    %11 = tpu.iota {dimensions = array<i32: 1>} : vector<8x256xi32>
    %c128_i32 = arith.constant 128 : i32
    %12 = vector.broadcast %c128_i32 : i32 to vector<8x256xi32>
    %13 = arith.cmpi sge, %11, %12 : vector<8x256xi32>
    %c192_i32 = arith.constant 192 : i32
    %14 = vector.broadcast %c192_i32 : i32 to vector<8x256xi32>
    %15 = arith.cmpi slt, %11, %14 : vector<8x256xi32>
    %16 = arith.andi %13, %15 : vector<8x256xi1>
    %17 = math.tanh %10 : vector<8x256xf32>
    %18 = arith.negf %10 : vector<8x256xf32>
    %19 = math.exp %18 : vector<8x256xf32>
    %cst_9 = arith.constant 1.000000e+00 : f32
    %20 = vector.broadcast %cst_9 : f32 to vector<8x256xf32>
    %21 = arith.addf %20, %19 : vector<8x256xf32>
    %22 = arith.divf %20, %21 : vector<8x256xf32>
    %23 = arith.select %16, %17, %22 : vector<8x256xi1>, vector<8x256xf32>
    %24 = vector.extract_strided_slice %23 {offsets = [0, 0], sizes = [8, 64], strides = [1, 1]} : vector<8x256xf32> to vector<8x64xf32>
    %25 = vector.extract_strided_slice %23 {offsets = [0, 64], sizes = [8, 64], strides = [1, 1]} : vector<8x256xf32> to vector<8x64xf32>
    %26 = vector.extract_strided_slice %23 {offsets = [0, 128], sizes = [8, 64], strides = [1, 1]} : vector<8x256xf32> to vector<8x64xf32>
    %27 = vector.extract_strided_slice %23 {offsets = [0, 192], sizes = [8, 64], strides = [1, 1]} : vector<8x256xf32> to vector<8x64xf32>
    %28 = arith.mulf %25, %4 : vector<8x64xf32>
    %29 = arith.mulf %24, %26 : vector<8x64xf32>
    %30 = arith.addf %28, %29 : vector<8x64xf32>
    %31 = math.tanh %30 : vector<8x64xf32>
    %32 = arith.mulf %27, %31 : vector<8x64xf32>
    %c4_i32 = arith.constant 4 : i32
    %33 = arith.muli %arg0, %c4_i32 : i32
    %34 = arith.addi %33, %c0_i32_4 : i32
    %c4_i32_10 = arith.constant 4 : i32
    %35 = arith.cmpi slt, %34, %c4_i32_10 : i32
    %36 = arith.select %35, %32, %3 : vector<8x64xf32>
    %37 = arith.select %35, %30, %4 : vector<8x64xf32>
    %38 = arith.index_cast %c0_i32_4 : i32 to index
    %c0_11 = arith.constant 0 : index
    %c0_12 = arith.constant 0 : index
    %39 = vector.load %arg3[%38, %c0_11, %c0_12] : memref<4x8x64xf32, #tpu.memory_space<vmem>>, vector<1x8x64xf32>
    %40 = vector.shape_cast %39 : vector<1x8x64xf32> to vector<8x64xf32>
    %41 = vector.shape_cast %36 : vector<8x64xf32> to vector<1x8x64xf32>
    tpu.vector_store %arg3[%38, %c0_11, %c0_12], %41 {strides = array<i32>} : memref<4x8x64xf32, #tpu.memory_space<vmem>>, vector<1x8x64xf32>,
    %c1_i32 = arith.constant 1 : i32
    %42 = arith.index_cast %c1_i32 : i32 to index
    %c0_13 = arith.constant 0 : index
    %c0_14 = arith.constant 0 : index
    %43 = vector.load %arg1[%42, %c0_13, %c0_14] : memref<4x8x256xf32, #tpu.memory_space<vmem>>, vector<1x8x256xf32>
    %44 = vector.shape_cast %43 : vector<1x8x256xf32> to vector<8x256xf32>
    %c0_15 = arith.constant 0 : index
    %c0_16 = arith.constant 0 : index
    %45 = vector.load %arg2[%c0_15, %c0_16] : memref<64x256xf32, #tpu.memory_space<vmem>>, vector<64x256xf32>
    %cst_17 = arith.constant dense<0.000000e+00> : vector<8x256xf32>
    %46 = tpu.matmul %36, %45, %cst_17 {dimension_numbers = #tpu.dot_dimension_numbers<[1], [0], [0], [1], [0, 0, 1, 1], [], []>} : vector<8x64xf32>, vector<64x256xf32>, vector<8x256xf32> -> vector<8x256xf32>
    %47 = arith.addf %44, %46 : vector<8x256xf32>
    %48 = tpu.iota {dimensions = array<i32: 1>} : vector<8x256xi32>
    %c128_i32_18 = arith.constant 128 : i32
    %49 = vector.broadcast %c128_i32_18 : i32 to vector<8x256xi32>
    %50 = arith.cmpi sge, %48, %49 : vector<8x256xi32>
    %c192_i32_19 = arith.constant 192 : i32
    %51 = vector.broadcast %c192_i32_19 : i32 to vector<8x256xi32>
    %52 = arith.cmpi slt, %48, %51 : vector<8x256xi32>
    %53 = arith.andi %50, %52 : vector<8x256xi1>
    %54 = math.tanh %47 : vector<8x256xf32>
    %55 = arith.negf %47 : vector<8x256xf32>
    %56 = math.exp %55 : vector<8x256xf32>
    %cst_20 = arith.constant 1.000000e+00 : f32
    %57 = vector.broadcast %cst_20 : f32 to vector<8x256xf32>
    %58 = arith.addf %57, %56 : vector<8x256xf32>
    %59 = arith.divf %57, %58 : vector<8x256xf32>
    %60 = arith.select %53, %54, %59 : vector<8x256xi1>, vector<8x256xf32>
    %61 = vector.extract_strided_slice %60 {offsets = [0, 0], sizes = [8, 64], strides = [1, 1]} : vector<8x256xf32> to vector<8x64xf32>
    %62 = vector.extract_strided_slice %60 {offsets = [0, 64], sizes = [8, 64], strides = [1, 1]} : vector<8x256xf32> to vector<8x64xf32>
    %63 = vector.extract_strided_slice %60 {offsets = [0, 128], sizes = [8, 64], strides = [1, 1]} : vector<8x256xf32> to vector<8x64xf32>
    %64 = vector.extract_strided_slice %60 {offsets = [0, 192], sizes = [8, 64], strides = [1, 1]} : vector<8x256xf32> to vector<8x64xf32>
    %65 = arith.mulf %62, %37 : vector<8x64xf32>
    %66 = arith.mulf %61, %63 : vector<8x64xf32>
    %67 = arith.addf %65, %66 : vector<8x64xf32>
    %68 = math.tanh %67 : vector<8x64xf32>
    %69 = arith.mulf %64, %68 : vector<8x64xf32>
    %c4_i32_21 = arith.constant 4 : i32
    %70 = arith.muli %arg0, %c4_i32_21 : i32
    %71 = arith.addi %70, %c1_i32 : i32
    %c4_i32_22 = arith.constant 4 : i32
    %72 = arith.cmpi slt, %71, %c4_i32_22 : i32
    %73 = arith.select %72, %69, %36 : vector<8x64xf32>
    %74 = arith.select %72, %67, %37 : vector<8x64xf32>
    %75 = arith.index_cast %c1_i32 : i32 to index
    %c0_23 = arith.constant 0 : index
    %c0_24 = arith.constant 0 : index
    %76 = vector.load %arg3[%75, %c0_23, %c0_24] : memref<4x8x64xf32, #tpu.memory_space<vmem>>, vector<1x8x64xf32>
    %77 = vector.shape_cast %76 : vector<1x8x64xf32> to vector<8x64xf32>
    %78 = vector.shape_cast %73 : vector<8x64xf32> to vector<1x8x64xf32>
    tpu.vector_store %arg3[%75, %c0_23, %c0_24], %78 {strides = array<i32>} : memref<4x8x64xf32, #tpu.memory_space<vmem>>, vector<1x8x64xf32>,
    %c2_i32 = arith.constant 2 : i32
    %79 = arith.index_cast %c2_i32 : i32 to index
    %c0_25 = arith.constant 0 : index
    %c0_26 = arith.constant 0 : index
    %80 = vector.load %arg1[%79, %c0_25, %c0_26] : memref<4x8x256xf32, #tpu.memory_space<vmem>>, vector<1x8x256xf32>
    %81 = vector.shape_cast %80 : vector<1x8x256xf32> to vector<8x256xf32>
    %c0_27 = arith.constant 0 : index
    %c0_28 = arith.constant 0 : index
    %82 = vector.load %arg2[%c0_27, %c0_28] : memref<64x256xf32, #tpu.memory_space<vmem>>, vector<64x256xf32>
    %cst_29 = arith.constant dense<0.000000e+00> : vector<8x256xf32>
    %83 = tpu.matmul %73, %82, %cst_29 {dimension_numbers = #tpu.dot_dimension_numbers<[1], [0], [0], [1], [0, 0, 1, 1], [], []>} : vector<8x64xf32>, vector<64x256xf32>, vector<8x256xf32> -> vector<8x256xf32>
    %84 = arith.addf %81, %83 : vector<8x256xf32>
    %85 = tpu.iota {dimensions = array<i32: 1>} : vector<8x256xi32>
    %c128_i32_30 = arith.constant 128 : i32
    %86 = vector.broadcast %c128_i32_30 : i32 to vector<8x256xi32>
    %87 = arith.cmpi sge, %85, %86 : vector<8x256xi32>
    %c192_i32_31 = arith.constant 192 : i32
    %88 = vector.broadcast %c192_i32_31 : i32 to vector<8x256xi32>
    %89 = arith.cmpi slt, %85, %88 : vector<8x256xi32>
    %90 = arith.andi %87, %89 : vector<8x256xi1>
    %91 = math.tanh %84 : vector<8x256xf32>
    %92 = arith.negf %84 : vector<8x256xf32>
    %93 = math.exp %92 : vector<8x256xf32>
    %cst_32 = arith.constant 1.000000e+00 : f32
    %94 = vector.broadcast %cst_32 : f32 to vector<8x256xf32>
    %95 = arith.addf %94, %93 : vector<8x256xf32>
    %96 = arith.divf %94, %95 : vector<8x256xf32>
    %97 = arith.select %90, %91, %96 : vector<8x256xi1>, vector<8x256xf32>
    %98 = vector.extract_strided_slice %97 {offsets = [0, 0], sizes = [8, 64], strides = [1, 1]} : vector<8x256xf32> to vector<8x64xf32>
    %99 = vector.extract_strided_slice %97 {offsets = [0, 64], sizes = [8, 64], strides = [1, 1]} : vector<8x256xf32> to vector<8x64xf32>
    %100 = vector.extract_strided_slice %97 {offsets = [0, 128], sizes = [8, 64], strides = [1, 1]} : vector<8x256xf32> to vector<8x64xf32>
    %101 = vector.extract_strided_slice %97 {offsets = [0, 192], sizes = [8, 64], strides = [1, 1]} : vector<8x256xf32> to vector<8x64xf32>
    %102 = arith.mulf %99, %74 : vector<8x64xf32>
    %103 = arith.mulf %98, %100 : vector<8x64xf32>
    %104 = arith.addf %102, %103 : vector<8x64xf32>
    %105 = math.tanh %104 : vector<8x64xf32>
    %106 = arith.mulf %101, %105 : vector<8x64xf32>
    %c4_i32_33 = arith.constant 4 : i32
    %107 = arith.muli %arg0, %c4_i32_33 : i32
    %108 = arith.addi %107, %c2_i32 : i32
    %c4_i32_34 = arith.constant 4 : i32
    %109 = arith.cmpi slt, %108, %c4_i32_34 : i32
    %110 = arith.select %109, %106, %73 : vector<8x64xf32>
    %111 = arith.select %109, %104, %74 : vector<8x64xf32>
    %112 = arith.index_cast %c2_i32 : i32 to index
    %c0_35 = arith.constant 0 : index
    %c0_36 = arith.constant 0 : index
    %113 = vector.load %arg3[%112, %c0_35, %c0_36] : memref<4x8x64xf32, #tpu.memory_space<vmem>>, vector<1x8x64xf32>
    %114 = vector.shape_cast %113 : vector<1x8x64xf32> to vector<8x64xf32>
    %115 = vector.shape_cast %110 : vector<8x64xf32> to vector<1x8x64xf32>
    tpu.vector_store %arg3[%112, %c0_35, %c0_36], %115 {strides = array<i32>} : memref<4x8x64xf32, #tpu.memory_space<vmem>>, vector<1x8x64xf32>,
    %c3_i32 = arith.constant 3 : i32
    %116 = arith.index_cast %c3_i32 : i32 to index
    %c0_37 = arith.constant 0 : index
    %c0_38 = arith.constant 0 : index
    %117 = vector.load %arg1[%116, %c0_37, %c0_38] : memref<4x8x256xf32, #tpu.memory_space<vmem>>, vector<1x8x256xf32>
    %118 = vector.shape_cast %117 : vector<1x8x256xf32> to vector<8x256xf32>
    %c0_39 = arith.constant 0 : index
    %c0_40 = arith.constant 0 : index
    %119 = vector.load %arg2[%c0_39, %c0_40] : memref<64x256xf32, #tpu.memory_space<vmem>>, vector<64x256xf32>
    %cst_41 = arith.constant dense<0.000000e+00> : vector<8x256xf32>
    %120 = tpu.matmul %110, %119, %cst_41 {dimension_numbers = #tpu.dot_dimension_numbers<[1], [0], [0], [1], [0, 0, 1, 1], [], []>} : vector<8x64xf32>, vector<64x256xf32>, vector<8x256xf32> -> vector<8x256xf32>
    %121 = arith.addf %118, %120 : vector<8x256xf32>
    %122 = tpu.iota {dimensions = array<i32: 1>} : vector<8x256xi32>
    %c128_i32_42 = arith.constant 128 : i32
    %123 = vector.broadcast %c128_i32_42 : i32 to vector<8x256xi32>
    %124 = arith.cmpi sge, %122, %123 : vector<8x256xi32>
    %c192_i32_43 = arith.constant 192 : i32
    %125 = vector.broadcast %c192_i32_43 : i32 to vector<8x256xi32>
    %126 = arith.cmpi slt, %122, %125 : vector<8x256xi32>
    %127 = arith.andi %124, %126 : vector<8x256xi1>
    %128 = math.tanh %121 : vector<8x256xf32>
    %129 = arith.negf %121 : vector<8x256xf32>
    %130 = math.exp %129 : vector<8x256xf32>
    %cst_44 = arith.constant 1.000000e+00 : f32
    %131 = vector.broadcast %cst_44 : f32 to vector<8x256xf32>
    %132 = arith.addf %131, %130 : vector<8x256xf32>
    %133 = arith.divf %131, %132 : vector<8x256xf32>
    %134 = arith.select %127, %128, %133 : vector<8x256xi1>, vector<8x256xf32>
    %135 = vector.extract_strided_slice %134 {offsets = [0, 0], sizes = [8, 64], strides = [1, 1]} : vector<8x256xf32> to vector<8x64xf32>
    %136 = vector.extract_strided_slice %134 {offsets = [0, 64], sizes = [8, 64], strides = [1, 1]} : vector<8x256xf32> to vector<8x64xf32>
    %137 = vector.extract_strided_slice %134 {offsets = [0, 128], sizes = [8, 64], strides = [1, 1]} : vector<8x256xf32> to vector<8x64xf32>
    %138 = vector.extract_strided_slice %134 {offsets = [0, 192], sizes = [8, 64], strides = [1, 1]} : vector<8x256xf32> to vector<8x64xf32>
    %139 = arith.mulf %136, %111 : vector<8x64xf32>
    %140 = arith.mulf %135, %137 : vector<8x64xf32>
    %141 = arith.addf %139, %140 : vector<8x64xf32>
    %142 = math.tanh %141 : vector<8x64xf32>
    %143 = arith.mulf %138, %142 : vector<8x64xf32>
    %c4_i32_45 = arith.constant 4 : i32
    %144 = arith.muli %arg0, %c4_i32_45 : i32
    %145 = arith.addi %144, %c3_i32 : i32
    %c4_i32_46 = arith.constant 4 : i32
    %146 = arith.cmpi slt, %145, %c4_i32_46 : i32
    %147 = arith.select %146, %143, %110 : vector<8x64xf32>
    %148 = arith.select %146, %141, %111 : vector<8x64xf32>
    %149 = arith.index_cast %c3_i32 : i32 to index
    %c0_47 = arith.constant 0 : index
    %c0_48 = arith.constant 0 : index
    %150 = vector.load %arg3[%149, %c0_47, %c0_48] : memref<4x8x64xf32, #tpu.memory_space<vmem>>, vector<1x8x64xf32>
    %151 = vector.shape_cast %150 : vector<1x8x64xf32> to vector<8x64xf32>
    %152 = vector.shape_cast %147 : vector<8x64xf32> to vector<1x8x64xf32>
    tpu.vector_store %arg3[%149, %c0_47, %c0_48], %152 {strides = array<i32>} : memref<4x8x64xf32, #tpu.memory_space<vmem>>, vector<1x8x64xf32>,
    %c4_i32_49 = arith.constant 4 : i32
    %c0_50 = arith.constant 0 : index
    %c0_51 = arith.constant 0 : index
    %153 = vector.load %arg5[%c0_50, %c0_51] : memref<8x64xf32, #tpu.memory_space<vmem>>, vector<8x64xf32>
    tpu.vector_store %arg5[%c0_50, %c0_51], %147 {strides = array<i32>} : memref<8x64xf32, #tpu.memory_space<vmem>>, vector<8x64xf32>,
    %c0_52 = arith.constant 0 : index
    %c0_53 = arith.constant 0 : index
    %154 = vector.load %arg6[%c0_52, %c0_53] : memref<8x64xf32, #tpu.memory_space<vmem>>, vector<8x64xf32>
    tpu.vector_store %arg6[%c0_52, %c0_53], %148 {strides = array<i32>} : memref<8x64xf32, #tpu.memory_space<vmem>>, vector<8x64xf32>,
    %c0_i32_54 = arith.constant 0 : i32
    %155 = arith.cmpi eq, %arg0, %c0_i32_54 : i32
    %156 = arith.extui %155 : i1 to i32
    %c0_i32_55 = arith.constant 0 : i32
    %157 = arith.cmpi ne, %156, %c0_i32_55 : i32
    scf.if %157 {
      %c0_56 = arith.constant 0 : index
      %c0_57 = arith.constant 0 : index
      %158 = vector.load %arg4[%c0_56, %c0_57] : memref<8x64xf32, #tpu.memory_space<vmem>>, vector<8x64xf32>
      tpu.vector_store %arg4[%c0_56, %c0_57], %148 {strides = array<i32>} : memref<8x64xf32, #tpu.memory_space<vmem>>, vector<8x64xf32>,
    } else {
    }
    return
  }
  func.func @transform_0(%arg0: i32) -> (i32, i32, i32) {
    %c0_i32 = arith.constant 0 : i32
    %c0_i32_0 = arith.constant 0 : i32
    %c0_i32_1 = arith.constant 0 : i32
    return %arg0, %c0_i32, %c0_i32_0 : i32, i32, i32
  }
  func.func @transform_1(%arg0: i32) -> (i32, i32) {
    %c0_i32 = arith.constant 0 : i32
    %c0_i32_0 = arith.constant 0 : i32
    %c0_i32_1 = arith.constant 0 : i32
    return %c0_i32, %c0_i32_0 : i32, i32
  }
  func.func @transform_2(%arg0: i32) -> (i32, i32, i32) {
    %c0_i32 = arith.constant 0 : i32
    %c0_i32_0 = arith.constant 0 : i32
    %c0_i32_1 = arith.constant 0 : i32
    return %arg0, %c0_i32, %c0_i32_0 : i32, i32, i32
  }
  func.func @transform_3(%arg0: i32) -> (i32, i32) {
    %c0_i32 = arith.constant 0 : i32
    %c0_i32_0 = arith.constant 0 : i32
    %c0_i32_1 = arith.constant 0 : i32
    return %c0_i32, %c0_i32_0 : i32, i32
  }
}

</mosaic_0001>

<bundles_post_ra>
// kernel: pyramidal_rnn_forward.2
= control target key start
LH: loop header
LB: loop body
LE: loop exit
PB: predicated region body
PF: predicated region fallthrough
CT: control target
= control target key end

     0   :  { %vm17_vm0 = vcmask 523264   ;;  %v639_v3 = vmov 0.0   ;;  %s640_s13 = smov 64   ;;  %v86_v31 = vlaneseq  ;;  %s786_s1 = inlined_call_operand.vmem [shape: f32[64,256], index: 1, kind: input, shape index: {}]   ;;  %s787_s0 = inlined_call_operand.vmem [shape: f32[4,8,256], index: 0, kind: input, shape index: {}]   ;;  %s788_s2 = inlined_call_operand.vmem [shape: f32[4,8,64], index: 2, kind: output, shape index: {0}]   ;;  %s789_s3 = inlined_call_operand.vmem [shape: f32[8,64], index: 3, kind: output, shape index: {1}]  }
   0x1   :  { %v38_v0 = vld [vmem:[%s786_s1 + $0x70] sm:$0xff]  ;;  %v39_v1 = vld [vmem:[%s786_s1 + $0x78] sm:$0xff]  ;;  %v36_v2 = vld [vmem:[%s786_s1 + $0x60] sm:$0xff]  ;;  %18 = vst.msk [vmem:[#allocation2] sm:$0xff] %vm17_vm0, %v639_v3 }
   0x2   :  { %52 = vmatpush.msra.mxu0 %v38_v0  ;;  %72 = vmatpush.msra.mxu1 %v39_v1  ;;  %v37_v4 = vld [vmem:[%s786_s1 + $0x68] sm:$0xff]  ;;  %19 = vst.msk [vmem:[#allocation3] sm:$0xff] %vm17_vm0, %v639_v3  ;;  %v34_v5 = vld [vmem:[%s786_s1 + $0x50] sm:$0xff]  ;;  %v35_v6 = vld [vmem:[%s786_s1 + $0x58] sm:$0xff]  ;;  %v87_v33 = vand.u32 127, %v86_v31 }
   0x3   :  { %194 = vmatpush.msra.mxu2 %v38_v0  ;;  %214 = vmatpush.msra.mxu3 %v39_v1  ;;  %v32_v7 = vld [vmem:[%s786_s1 + $0x40] sm:$0xff]  ;;  %v33_v8 = vld [vmem:[%s786_s1 + $0x48] sm:$0xff]  ;;  %v30_v9 = vld [vmem:[%s786_s1 + $0x30] sm:$0xff] }
   0x4   :  { %53 = vmatpush.msra.mxu0 %v36_v2  ;;  %73 = vmatpush.msra.mxu1 %v37_v4  ;;  %v31_v10 = vld [vmem:[%s786_s1 + $0x38] sm:$0xff]  ;;  %v28_v11 = vld [vmem:[%s786_s1 + $0x20] sm:$0xff]  ;;  %v29_v12 = vld [vmem:[%s786_s1 + $0x28] sm:$0xff]  ;;  %v720_v38 = vadd.s32 128, %v87_v33 }
   0x5   :  { %195 = vmatpush.msra.mxu2 %v36_v2  ;;  %215 = vmatpush.msra.mxu3 %v37_v4  ;;  %v26_v14 = vld [vmem:[%s786_s1 + $0x10] sm:$0xff]  ;;  %v27_v15 = vld [vmem:[%s786_s1 + $0x18] sm:$0xff]  ;;  %v24_v16 = vld [vmem:[%s786_s1] sm:$0xff] }
   0x6   :  { %54 = vmatpush.msra.mxu0 %v34_v5  ;;  %74 = vmatpush.msra.mxu1 %v35_v6  ;;  %v25_v17 = vld [vmem:[%s786_s1 + $0x8] sm:$0xff]  ;;  %v22_v19 = vld [vmem:[%s787_s0] sm:$0xff]  ;;  %vm92_vm6 = vcmp.lt.s32.totalorder %v720_v38, 192 }
   0x7   :  { %196 = vmatpush.msra.mxu2 %v34_v5  ;;  %216 = vmatpush.msra.mxu3 %v35_v6  ;;  %v23_v20 = vld [vmem:[%s787_s0 + $0x8] sm:$0xff] }
   0x8   :  { %55 = vmatpush.msra.mxu0 %v32_v7  ;;  %75 = vmatpush.msra.mxu1 %v33_v8  ;;  %v20_v18 = vld [vmem:[#allocation2] sm:$0xff] }
   0x9   :  { %v21_v13 = vld [vmem:[#allocation3] sm:$0xff]  ;;  %197 = vmatpush.msra.mxu2 %v32_v7  ;;  %217 = vmatpush.msra.mxu3 %v33_v8 }
   0xa   :  { %56 = vmatpush.msra.mxu0 %v30_v9  ;;  %76 = vmatpush.msra.mxu1 %v31_v10 }
   0xb   :  { %138 = vrot.lane.b32.xlu0 %v21_v13, %s640_s13  ;;  %198 = vmatpush.msra.mxu2 %v30_v9 }
   0xc   :  { %57 = vmatpush.msra.mxu0 %v28_v11  ;;  %77 = vmatpush.msra.mxu1 %v29_v12 }
   0xd   :  { %218 = vmatpush.msra.mxu3 %v31_v10  ;;  %199 = vmatpush.msra.mxu2 %v28_v11 }
   0xe   :  { %58 = vmatpush.msra.mxu0 %v26_v14  ;;  %78 = vmatpush.msra.mxu1 %v27_v15 }
   0xf   :  { %219 = vmatpush.msra.mxu3 %v29_v12  ;;  %200 = vmatpush.msra.mxu2 %v26_v14 }
  0x10   :  { %59 = vmatpush.msra.mxu0 %v24_v16  ;;  %79 = vmatpush.msra.mxu1 %v25_v17 }
  0x11   :  { %564 = vmatmul.msk.f32.vlgmr.msra.gmra.mxu0 %vm17_vm0, %v20_v18  ;;  %565 = vmatmul.msk.f32.vlgmr.msra.gmra.mxu1 %vm17_vm0, %v20_v18 }
  0x12   :  { %220 = vmatpush.msra.mxu3 %v27_v15  ;;  %201 = vmatpush.msra.mxu2 %v24_v16 }
  0x13   :  { %321 = vmatpush.msrb.mxu0 %v38_v0  ;;  %341 = vmatpush.msrb.mxu1 %v39_v1 }
  0x14   :  { %221 = vmatpush.msra.mxu3 %v25_v17  ;;  %448 = vmatpush.msrb.mxu2 %v38_v0  ;;  %v568_v0 = vld [vmem:[%s787_s0 + $0x10] sm:$0xff] }
  0x15   :  { %322 = vmatpush.msrb.mxu0 %v36_v2  ;;  %342 = vmatpush.msrb.mxu1 %v37_v4 }
  0x16   :  { %468 = vmatpush.msrb.mxu3 %v39_v1  ;;  %449 = vmatpush.msrb.mxu2 %v36_v2  ;;  %v569_v1 = vld [vmem:[%s787_s0 + $0x18] sm:$0xff] }
  0x17   :  { %323 = vmatpush.msrb.mxu0 %v34_v5  ;;  %343 = vmatpush.msrb.mxu1 %v35_v6 }
  0x18   :  { %469 = vmatpush.msrb.mxu3 %v37_v4  ;;  %450 = vmatpush.msrb.mxu2 %v34_v5 }
  0x19   :  { %324 = vmatpush.msrb.mxu0 %v32_v7  ;;  %344 = vmatpush.msrb.mxu1 %v33_v8 }
  0x1a   :  { %470 = vmatpush.msrb.mxu3 %v35_v6  ;;  %451 = vmatpush.msrb.mxu2 %v32_v7 }
  0x1b   :  { %325 = vmatpush.msrb.mxu0 %v30_v9  ;;  %345 = vmatpush.msrb.mxu1 %v31_v10 }
  0x1c   :  { %471 = vmatpush.msrb.mxu3 %v33_v8  ;;  %452 = vmatpush.msrb.mxu2 %v30_v9 }
  0x1d   :  { %326 = vmatpush.msrb.mxu0 %v28_v11  ;;  %346 = vmatpush.msrb.mxu1 %v29_v12 }
  0x1e   :  { %472 = vmatpush.msrb.mxu3 %v31_v10  ;;  %453 = vmatpush.msrb.mxu2 %v28_v11 }
  0x1f   :  { %327 = vmatpush.msrb.mxu0 %v26_v14  ;;  %347 = vmatpush.msrb.mxu1 %v27_v15 }
  0x20   :  { %473 = vmatpush.msrb.mxu3 %v29_v12  ;;  %454 = vmatpush.msrb.mxu2 %v26_v14 }
  0x21   :  { %328 = vmatpush.msrb.mxu0 %v24_v16  ;;  %348 = vmatpush.msrb.mxu1 %v25_v17 }
  0x22   :  { %474 = vmatpush.msrb.mxu3 %v27_v15  ;;  %455 = vmatpush.msrb.mxu2 %v24_v16 }
  0x24   :  { %475 = vmatpush.msrb.mxu3 %v25_v17 }
  0x7d   :  { %v139_v57 = vpop.permute.xlu0 %138 }
  0x8e   :  { %v61_v21 = vpop.f32.mrf.mxu0  ;;  %v81_v22 = vpop.f32.mrf.mxu1 }
  0x8f   :  { %v84_v23 = vadd.f32 %v61_v21, %v22_v19  ;;  %v85_v24 = vadd.f32 %v81_v22, %v23_v20 }
  0x91   :  { %v566_v25 = vmul.f32 -1.442695, %v84_v23  ;;  %v567_v26 = vmul.f32 -1.442695, %v85_v24 }
  0x93   :  { %591 = vpow2.f32 %v566_v25 }
  0x94   :  { %593 = vpow2.f32 %v567_v26 }
  0x99   :  { %v592_v27 = vpop.eup %591 }
  0x9a   :  { %v594_v28 = vpop.eup %593  ;;  %v103_v29 = vadd.f32 1.0, %v592_v27 }
  0x9b   :  { %v104_v30 = vadd.f32 1.0, %v594_v28 }
  0x9c   :  { %595 = vrcp.f32 %v103_v29  ;;  %v116_v39 = vand.u32 2147483648, %v103_v29  ;;  %v114_v42 = vand.u32 2147483647, %v103_v29  ;;  %vm110_vm3 = vweird.f32 %v103_v29 }
  0x9d   :  { %597 = vrcp.f32 %v104_v30  ;;  %v131_v43 = vand.u32 2147483648, %v104_v30  ;;  %v129_v45 = vand.u32 2147483647, %v104_v30  ;;  %vm125_vm5 = vweird.f32 %v104_v30 }
  0x9e   :  { %599 = vtanh.f32 %v85_v24  ;;  %v117_v47 = vor.u32 1.1754944e-38, %v116_v39  ;;  %vm115_vm7 = vcmp.eq.f32.partialorder %v114_v42, 8.507059e+37  ;;  %v575_v42 = vld [vmem:[%s787_s0 + $0x20] sm:$0xff] }
  0x9f   :  { %v132_v50 = vor.u32 1.1754944e-38, %v131_v43  ;;  %vm130_vm9 = vcmp.eq.f32.partialorder %v129_v45, 8.507059e+37  ;;  %v576_v43 = vld [vmem:[%s787_s0 + $0x28] sm:$0xff] }
  0xa2   :  { %v596_v32 = vpop.eup %595 }
  0xa3   :  { %v598_v34 = vpop.eup %597  ;;  %v106_v35 = vmul.f32 %v596_v32, %v103_v29  ;;  %vm111_vm1 = vweird.f32 %v596_v32 }
  0xa4   :  { %v121_v36 = vmul.f32 %v598_v34, %v104_v30  ;;  %vm126_vm2 = vweird.f32 %v598_v34  ;;  %vm112_vm4 = vmor %vm110_vm3, %vm111_vm1  ;;  %v600_v51 = vpop.eup %599 }
  0xa5   :  { %v107_v37 = vsub.f32 1.0, %v106_v35  ;;  %vm127_vm8 = vmor %vm125_vm5, %vm126_vm2 }
  0xa6   :  { %v122_v40 = vsub.f32 1.0, %v121_v36 }
  0xa7   :  { %v108_v41 = vmul.f32 %v596_v32, %v107_v37 }
  0xa8   :  { %v123_v44 = vmul.f32 %v598_v34, %v122_v40 }
  0xa9   :  { %v109_v46 = vadd.f32 %v596_v32, %v108_v41 }
  0xaa   :  { %v124_v48 = vadd.f32 %v598_v34, %v123_v44 }
  0xab   :  { %v113_v49 = vsel %vm112_vm4, %v596_v32, %v109_v46 }
  0xac   :  { %v118_v52 = vsel %vm115_vm7, %v117_v47, %v113_v49  ;;  %v128_v53 = vsel %vm127_vm8, %v598_v34, %v124_v48 }
  0xad   :  { %v133_v54 = vsel %vm130_vm9, %v132_v50, %v128_v53  ;;  %v141_v58 = vmul.f32 %v139_v57, %v118_v52 }
  0xae   :  { %v136_v55 = vsel %vm92_vm6, %v600_v51, %v133_v54 }
  0xaf   :  { %v142_v56 = vmul.f32 %v136_v55, %v118_v52 }
  0xb1   :  { %144 = vrot.lane.b32.xlu0 %v142_v56, %s640_s13 }
 0x123   :  { %v145_v59 = vpop.permute.xlu0 %144 }
 0x124   :  { %v147_v60 = vadd.f32 %v145_v59, %v141_v58 }
 0x126   :  { %601 = vtanh.f32 %v147_v60 }
 0x12c   :  { %v602_v61 = vpop.eup %601 }
 0x12d   :  { %v149_v62 = vmul.f32 %v602_v61, %v136_v55 }
 0x12f   :  { %161 = vrot.lane.b32.xlu1 %v149_v62, %s640_s13 }
 0x1a1   :  { %v162_v63 = vpop.permute.xlu1 %161 }
 0x1a2   :  { %164 = vst.msk [vmem:[%s788_s2] sm:$0xff] %vm17_vm0, %v162_v63  ;;  %570 = vmatmul.msk.f32.vlgmr.msra.gmra.mxu2 %vm17_vm0, %v162_v63  ;;  %571 = vmatmul.msk.f32.vlgmr.msra.gmra.mxu3 %vm17_vm0, %v162_v63 }
 0x225   :  { %v203_v2 = vpop.f32.mrf.mxu2  ;;  %v223_v3 = vpop.f32.mrf.mxu3 }
 0x226   :  { %v226_v4 = vadd.f32 %v568_v0, %v203_v2  ;;  %v227_v5 = vadd.f32 %v569_v1, %v223_v3 }
 0x228   :  { %v572_v6 = vmul.f32 -1.442695, %v226_v4  ;;  %v573_v7 = vmul.f32 -1.442695, %v227_v5 }
 0x22a   :  { %603 = vpow2.f32 %v572_v6 }
 0x22b   :  { %605 = vpow2.f32 %v573_v7 }
 0x230   :  { %v604_v8 = vpop.eup %603 }
 0x231   :  { %v606_v9 = vpop.eup %605  ;;  %v236_v10 = vadd.f32 1.0, %v604_v8 }
 0x232   :  { %v237_v11 = vadd.f32 1.0, %v606_v9 }
 0x233   :  { %607 = vrcp.f32 %v236_v10  ;;  %v249_v18 = vand.u32 2147483648, %v236_v10  ;;  %v247_v20 = vand.u32 2147483647, %v236_v10  ;;  %vm243_vm12 = vweird.f32 %v236_v10 }
 0x234   :  { %609 = vrcp.f32 %v237_v11  ;;  %v264_v21 = vand.u32 2147483648, %v237_v11  ;;  %v262_v23 = vand.u32 2147483647, %v237_v11  ;;  %vm258_vm14 = vweird.f32 %v237_v11 }
 0x235   :  { %611 = vtanh.f32 %v227_v5  ;;  %v250_v25 = vor.u32 1.1754944e-38, %v249_v18  ;;  %vm248_vm15 = vcmp.eq.f32.partialorder %v247_v20, 8.507059e+37  ;;  %v583_v20 = vld [vmem:[%s787_s0 + $0x38] sm:$0xff] }
 0x236   :  { %v265_v28 = vor.u32 1.1754944e-38, %v264_v21  ;;  %vm263_vm2 = vcmp.eq.f32.partialorder %v262_v23, 8.507059e+37 }
 0x239   :  { %v608_v12 = vpop.eup %607 }
 0x23a   :  { %v610_v13 = vpop.eup %609  ;;  %v239_v14 = vmul.f32 %v608_v12, %v236_v10  ;;  %vm244_vm10 = vweird.f32 %v608_v12 }
 0x23b   :  { %v254_v15 = vmul.f32 %v610_v13, %v237_v11  ;;  %vm259_vm11 = vweird.f32 %v610_v13  ;;  %vm245_vm13 = vmor %vm243_vm12, %vm244_vm10  ;;  %v612_v29 = vpop.eup %611 }
 0x23c   :  { %v240_v16 = vsub.f32 1.0, %v239_v14  ;;  %vm260_vm1 = vmor %vm258_vm14, %vm259_vm11 }
 0x23d   :  { %v255_v17 = vsub.f32 1.0, %v254_v15 }
 0x23e   :  { %v241_v19 = vmul.f32 %v608_v12, %v240_v16 }
 0x23f   :  { %v256_v22 = vmul.f32 %v610_v13, %v255_v17 }
 0x240   :  { %v242_v24 = vadd.f32 %v608_v12, %v241_v19  ;;  %v582_v19 = vld [vmem:[%s787_s0 + $0x30] sm:$0xff] }
 0x241   :  { %v257_v26 = vadd.f32 %v610_v13, %v256_v22 }
 0x242   :  { %v246_v27 = vsel %vm245_vm13, %v608_v12, %v242_v24 }
 0x243   :  { %v251_v30 = vsel %vm248_vm15, %v250_v25, %v246_v27  ;;  %v261_v31 = vsel %vm260_vm1, %v610_v13, %v257_v26 }
 0x244   :  { %v266_v32 = vsel %vm263_vm2, %v265_v28, %v261_v31  ;;  %v270_v35 = vmul.f32 %v251_v30, %v147_v60 }
 0x245   :  { %v269_v33 = vsel %vm92_vm6, %v612_v29, %v266_v32 }
 0x246   :  { %v271_v34 = vmul.f32 %v269_v33, %v251_v30 }
 0x248   :  { %273 = vrot.lane.b32.xlu1 %v271_v34, %s640_s13 }
 0x2ba   :  { %v274_v36 = vpop.permute.xlu1 %273 }
 0x2bb   :  { %v276_v37 = vadd.f32 %v274_v36, %v270_v35 }
 0x2bd   :  { %613 = vtanh.f32 %v276_v37 }
 0x2c3   :  { %v614_v39 = vpop.eup %613 }
 0x2c4   :  { %v278_v40 = vmul.f32 %v614_v39, %v269_v33 }
 0x2c6   :  { %287 = vrot.lane.b32.xlu2 %v278_v40, %s640_s13 }
 0x320   :  { %v288_v41 = vpop.permute.xlu2 %287 }
 0x321   :  { %574 = vst.msk [vmem:[%s788_s2 + $0x8] sm:$0xff] %vm17_vm0, %v288_v41  ;;  %577 = vmatmul.msk.f32.vlgmr.msrb.gmra.mxu0 %vm17_vm0, %v288_v41  ;;  %578 = vmatmul.msk.f32.vlgmr.msrb.gmra.mxu1 %vm17_vm0, %v288_v41 }
 0x39e   :  { %v330_v44 = vpop.f32.mrf.mxu0  ;;  %v350_v45 = vpop.f32.mrf.mxu1 }
 0x39f   :  { %v353_v46 = vadd.f32 %v575_v42, %v330_v44  ;;  %v354_v47 = vadd.f32 %v576_v43, %v350_v45 }
 0x3a1   :  { %v579_v48 = vmul.f32 -1.442695, %v353_v46  ;;  %v580_v49 = vmul.f32 -1.442695, %v354_v47 }
 0x3a3   :  { %615 = vpow2.f32 %v579_v48 }
 0x3a4   :  { %617 = vpow2.f32 %v580_v49 }
 0x3a9   :  { %v616_v50 = vpop.eup %615 }
 0x3aa   :  { %v618_v51 = vpop.eup %617  ;;  %v363_v52 = vadd.f32 1.0, %v616_v50 }
 0x3ab   :  { %v364_v53 = vadd.f32 1.0, %v618_v51 }
 0x3ac   :  { %619 = vrcp.f32 %v363_v52  ;;  %v376_v60 = vand.u32 2147483648, %v363_v52  ;;  %v374_v62 = vand.u32 2147483647, %v363_v52  ;;  %vm370_vm5 = vweird.f32 %v363_v52 }
 0x3ad   :  { %621 = vrcp.f32 %v364_v53  ;;  %v391_v63 = vand.u32 2147483648, %v364_v53  ;;  %v389_v1 = vand.u32 2147483647, %v364_v53  ;;  %vm385_vm8 = vweird.f32 %v364_v53 }
 0x3ae   :  { %623 = vtanh.f32 %v354_v47  ;;  %v377_v3 = vor.u32 1.1754944e-38, %v376_v60  ;;  %vm375_vm9 = vcmp.eq.f32.partialorder %v374_v62, 8.507059e+37 }
 0x3af   :  { %v392_v6 = vor.u32 1.1754944e-38, %v391_v63  ;;  %vm390_vm11 = vcmp.eq.f32.partialorder %v389_v1, 8.507059e+37 }
 0x3b2   :  { %v620_v54 = vpop.eup %619 }
 0x3b3   :  { %v622_v55 = vpop.eup %621  ;;  %v366_v56 = vmul.f32 %v620_v54, %v363_v52  ;;  %vm371_vm3 = vweird.f32 %v620_v54 }
 0x3b4   :  { %v381_v57 = vmul.f32 %v622_v55, %v364_v53  ;;  %vm386_vm4 = vweird.f32 %v622_v55  ;;  %vm372_vm7 = vmor %vm370_vm5, %vm371_vm3  ;;  %v624_v7 = vpop.eup %623 }
 0x3b5   :  { %v367_v58 = vsub.f32 1.0, %v366_v56  ;;  %vm387_vm10 = vmor %vm385_vm8, %vm386_vm4 }
 0x3b6   :  { %v382_v59 = vsub.f32 1.0, %v381_v57 }
 0x3b7   :  { %v368_v61 = vmul.f32 %v620_v54, %v367_v58 }
 0x3b8   :  { %v383_v0 = vmul.f32 %v622_v55, %v382_v59 }
 0x3b9   :  { %v369_v2 = vadd.f32 %v620_v54, %v368_v61 }
 0x3ba   :  { %v384_v4 = vadd.f32 %v622_v55, %v383_v0 }
 0x3bb   :  { %v373_v5 = vsel %vm372_vm7, %v620_v54, %v369_v2 }
 0x3bc   :  { %v378_v8 = vsel %vm375_vm9, %v377_v3, %v373_v5  ;;  %v388_v9 = vsel %vm387_vm10, %v622_v55, %v384_v4 }
 0x3bd   :  { %v393_v10 = vsel %vm390_vm11, %v392_v6, %v388_v9  ;;  %v397_v13 = vmul.f32 %v378_v8, %v276_v37 }
 0x3be   :  { %v396_v11 = vsel %vm92_vm6, %v624_v7, %v393_v10 }
 0x3bf   :  { %v398_v12 = vmul.f32 %v396_v11, %v378_v8 }
 0x3c1   :  { %400 = vrot.lane.b32.xlu2 %v398_v12, %s640_s13 }
 0x41b   :  { %v401_v14 = vpop.permute.xlu2 %400 }
 0x41c   :  { %v403_v15 = vadd.f32 %v401_v14, %v397_v13 }
 0x41e   :  { %625 = vtanh.f32 %v403_v15 }
 0x424   :  { %v626_v16 = vpop.eup %625 }
 0x425   :  { %v405_v17 = vmul.f32 %v626_v16, %v396_v11 }
 0x427   :  { %414 = vrot.lane.b32.xlu0 %v405_v17, %s640_s13 }
 0x499   :  { %v415_v18 = vpop.permute.xlu0 %414 }
 0x49a   :  { %581 = vst.msk [vmem:[%s788_s2 + $0x10] sm:$0xff] %vm17_vm0, %v415_v18  ;;  %584 = vmatmul.msk.f32.vlgmr.msrb.gmra.mxu2 %vm17_vm0, %v415_v18  ;;  %585 = vmatmul.msk.f32.vlgmr.msrb.gmra.mxu3 %vm17_vm0, %v415_v18 }
 0x51d   :  { %v457_v21 = vpop.f32.mrf.mxu2  ;;  %v477_v22 = vpop.f32.mrf.mxu3 }
 0x51e   :  { %v480_v23 = vadd.f32 %v582_v19, %v457_v21  ;;  %v481_v24 = vadd.f32 %v583_v20, %v477_v22 }
 0x520   :  { %v586_v25 = vmul.f32 -1.442695, %v480_v23  ;;  %v587_v26 = vmul.f32 -1.442695, %v481_v24 }
 0x522   :  { %627 = vpow2.f32 %v586_v25 }
 0x523   :  { %629 = vpow2.f32 %v587_v26 }
 0x528   :  { %v628_v27 = vpop.eup %627 }
 0x529   :  { %v630_v28 = vpop.eup %629  ;;  %v490_v29 = vadd.f32 1.0, %v628_v27 }
 0x52a   :  { %v491_v30 = vadd.f32 1.0, %v630_v28 }
 0x52b   :  { %631 = vrcp.f32 %v490_v29  ;;  %v503_v37 = vand.u32 2147483648, %v490_v29  ;;  %v501_v40 = vand.u32 2147483647, %v490_v29  ;;  %vm497_vm14 = vweird.f32 %v490_v29 }
 0x52c   :  { %633 = vrcp.f32 %v491_v30  ;;  %v518_v41 = vand.u32 2147483648, %v491_v30  ;;  %v516_v43 = vand.u32 2147483647, %v491_v30  ;;  %vm512_vm1 = vweird.f32 %v491_v30 }
 0x52d   :  { %635 = vtanh.f32 %v481_v24  ;;  %v504_v45 = vor.u32 1.1754944e-38, %v503_v37  ;;  %vm502_vm2 = vcmp.eq.f32.partialorder %v501_v40, 8.507059e+37 }
 0x52e   :  { %v519_v48 = vor.u32 1.1754944e-38, %v518_v41  ;;  %vm517_vm4 = vcmp.eq.f32.partialorder %v516_v43, 8.507059e+37 }
 0x531   :  { %v632_v31 = vpop.eup %631 }
 0x532   :  { %v634_v32 = vpop.eup %633  ;;  %v493_v33 = vmul.f32 %v632_v31, %v490_v29  ;;  %vm498_vm12 = vweird.f32 %v632_v31 }
 0x533   :  { %v508_v34 = vmul.f32 %v634_v32, %v491_v30  ;;  %vm513_vm13 = vweird.f32 %v634_v32  ;;  %vm499_vm15 = vmor %vm497_vm14, %vm498_vm12  ;;  %v636_v49 = vpop.eup %635 }
 0x534   :  { %v494_v35 = vsub.f32 1.0, %v493_v33  ;;  %vm514_vm3 = vmor %vm512_vm1, %vm513_vm13 }
 0x535   :  { %v509_v36 = vsub.f32 1.0, %v508_v34 }
 0x536   :  { %v495_v39 = vmul.f32 %v632_v31, %v494_v35 }
 0x537   :  { %v510_v42 = vmul.f32 %v634_v32, %v509_v36 }
 0x538   :  { %v496_v44 = vadd.f32 %v632_v31, %v495_v39 }
 0x539   :  { %v511_v46 = vadd.f32 %v634_v32, %v510_v42 }
 0x53a   :  { %v500_v47 = vsel %vm499_vm15, %v632_v31, %v496_v44 }
 0x53b   :  { %v505_v50 = vsel %vm502_vm2, %v504_v45, %v500_v47  ;;  %v515_v51 = vsel %vm514_vm3, %v634_v32, %v511_v46 }
 0x53c   :  { %v520_v52 = vsel %vm517_vm4, %v519_v48, %v515_v51  ;;  %v524_v55 = vmul.f32 %v505_v50, %v403_v15 }
 0x53d   :  { %v523_v53 = vsel %vm92_vm6, %v636_v49, %v520_v52 }
 0x53e   :  { %v525_v54 = vmul.f32 %v523_v53, %v505_v50 }
 0x540   :  { %527 = vrot.lane.b32.xlu1 %v525_v54, %s640_s13 }
 0x5b2   :  { %v528_v56 = vpop.permute.xlu1 %527 }
 0x5b3   :  { %v530_v57 = vadd.f32 %v528_v56, %v524_v55 }
 0x5b5   :  { %637 = vtanh.f32 %v530_v57  ;;  %548 = vrot.lane.b32.xlu0 %v530_v57, %s640_s13 }
 0x5bb   :  { %v638_v58 = vpop.eup %637 }
 0x5bc   :  { %v532_v59 = vmul.f32 %v638_v58, %v523_v53 }
 0x5be   :  { %541 = vrot.lane.b32.xlu2 %v532_v59, %s640_s13 }
 0x618   :  { %v542_v60 = vpop.permute.xlu2 %541 }
 0x619   :  { %588 = vst.msk [vmem:[%s788_s2 + $0x18] sm:$0xff] %vm17_vm0, %v542_v60 }
 0x61a   :  { %546 = vst.msk [vmem:[#allocation2] sm:$0xff] %vm17_vm0, %v542_v60 }
 0x627   :  { %v549_v38 = vpop.permute.xlu0 %548 }
 0x628   :  { %551 = vst.msk [vmem:[#allocation3] sm:$0xff] %vm17_vm0, %v549_v38 }
 0x629   :  { %555 = vst.msk [vmem:[%s789_s3] sm:$0xff] %vm17_vm0, %v549_v38 }

</bundles_post_ra>
